<compile_context>
chip_gen: v6e
topology: v6e:2x2x1
jax: 0.10.0
libtpu: 0.0.40
codegen_flags: <defaults>
</compile_context>

<pallas_src>
import jax
import jax.numpy as jnp
from jax import lax
from jax.experimental import pallas as pl
from jax.experimental.pallas import tpu as pltpu

EPS = 1e-5


def metacaru_kernel(meta_ref, img_ref, wfg_ref, vec_ref, out_ref):
    meta = meta_ref[...].astype(jnp.float32)     # [B, Dmeta]
    img = img_ref[...].astype(jnp.float32)       # [B, TN]
    tn = img.shape[1]

    # Packed per-feature vectors (interleaved [f_tile | g_tile] layout):
    bias_fg  = vec_ref[0:1, :]                   # [1, 2*TN]  Linear biases bf|bg
    gamma_fg = vec_ref[1:2, :]                   # [1, 2*TN]  BN1|BN2 gamma
    beta_fg  = vec_ref[2:3, :]                   # [1, 2*TN]  BN1|BN2 beta
    g3       = vec_ref[3:4, :tn]                 # [1, TN]    final BN gamma
    b3       = vec_ref[4:5, :tn]                 # [1, TN]    final BN beta

    # One fused MXU matmul for both Linear layers:  [B, 2*TN]
    lin = jnp.dot(meta, wfg_ref[...], preferred_element_type=jnp.float32) + bias_fg

    # Fused BN1/BN2 (training-mode batch stats, biased variance).
    mean = jnp.mean(lin, axis=0, keepdims=True)
    cen = lin - mean
    var = jnp.mean(cen * cen, axis=0, keepdims=True)
    fg = gamma_fg * (cen * lax.rsqrt(var + EPS)) + beta_fg

    fm = fg[:, :tn]                              # Fm(meta)
    gm = fg[:, tn:]                              # Gm(meta)

    # CARU gating (VPU/EUP elementwise).
    n = jnp.tanh(img + fm)
    z = jax.nn.sigmoid(gm + img)
    l = jax.nn.sigmoid(fm) * z
    h = (1.0 - l) * img + l * n

    # Final BN.
    mean3 = jnp.mean(h, axis=0, keepdims=True)
    c3 = h - mean3
    var3 = jnp.mean(c3 * c3, axis=0, keepdims=True)
    out_ref[...] = (g3 * (c3 * lax.rsqrt(var3 + EPS)) + b3).astype(out_ref.dtype)


def _choose_tn(dimg, max_tn=512):
    """Largest multiple-of-128 tile (<= max_tn) that divides Dimg, else Dimg."""
    if dimg <= max_tn or dimg % 128 != 0:
        return dimg
    tn = max_tn - (max_tn % 128)
    while dimg % tn != 0:
        tn -= 128
    return tn


def pack_params(params, *, tn):
    """Pack wf|wg into one [Dmeta, 2*Dimg] weight and the eight per-feature
    vectors into one [8, 2*Dimg] array, both interleaved per TN-wide tile so a
    contiguous 2*TN block j contains exactly the f- and g-columns of tile j."""
    wf = jnp.asarray(params["wf"], jnp.float32)
    wg = jnp.asarray(params["wg"], jnp.float32)
    dmeta, dimg = wf.shape
    nb = dimg // tn
    assert nb * tn == dimg

    def fuse_w(a, b):
        a = a.reshape(dmeta, nb, tn)
        b = b.reshape(dmeta, nb, tn)
        return jnp.concatenate([a, b], axis=2).reshape(dmeta, nb * 2 * tn)

    def fuse_v(a, b):
        a = jnp.asarray(a, jnp.float32).reshape(1, nb, tn)
        b = jnp.asarray(b, jnp.float32).reshape(1, nb, tn)
        return jnp.concatenate([a, b], axis=2).reshape(1, nb * 2 * tn)

    zeros = jnp.zeros((1, dimg), jnp.float32)
    vecs = jnp.concatenate([
        fuse_v(params["bf"], params["bg"]),   # row 0: fused Linear bias
        fuse_v(params["g1"], params["g2"]),   # row 1: fused BN1/BN2 gamma
        fuse_v(params["b1"], params["b2"]),   # row 2: fused BN1/BN2 beta
        fuse_v(params["g3"], zeros),          # row 3: final BN gamma (left half)
        fuse_v(params["b3"], zeros),          # row 4: final BN beta  (left half)
        fuse_v(zeros, zeros),                 # rows 5-7: pad to a full (8,128) tile
        fuse_v(zeros, zeros),
        fuse_v(zeros, zeros),
    ], axis=0)
    return fuse_w(wf, wg), vecs


def metacaru_forward(img, meta, wfg, vecs, *, tn):
    B, Dimg = img.shape
    _, Dmeta = meta.shape
    assert Dimg % tn == 0
    nb = Dimg // tn

    return pl.pallas_call(
        metacaru_kernel,
        out_shape=jax.ShapeDtypeStruct((B, Dimg), jnp.float32),
        grid=(nb,),
        in_specs=[
            pl.BlockSpec((B, Dmeta),      lambda j: (0, 0)),   # meta (replicated)
            pl.BlockSpec((B, tn),         lambda j: (0, j)),   # img feature tile
            pl.BlockSpec((Dmeta, 2 * tn), lambda j: (0, j)),   # fused wf|wg tile
            pl.BlockSpec((8, 2 * tn),     lambda j: (0, j)),   # packed vectors tile
        ],
        out_specs=pl.BlockSpec((B, tn), lambda j: (0, j)),
        compiler_params=pltpu.CompilerParams(
            dimension_semantics=("parallel",),
            vmem_limit_bytes=32 * 1024 * 1024,
        ),
    )(meta, img, wfg, vecs)


def reference_forward(img, meta, params):
    def bn(x, gamma, beta):
        mean = jnp.mean(x, axis=0, keepdims=True)
        var = jnp.mean((x - mean) ** 2, axis=0, keepdims=True)
        return gamma * (x - mean) / jnp.sqrt(var + EPS) + beta

    hi = lax.Precision.HIGHEST
    fm = bn(jnp.dot(meta, params["wf"], precision=hi) + params["bf"],
            params["g1"], params["b1"])
    gm = bn(jnp.dot(meta, params["wg"], precision=hi) + params["bg"],
            params["g2"], params["b2"])
    n = jnp.tanh(img + fm)
    z = jax.nn.sigmoid(gm + img)
    l = jax.nn.sigmoid(fm) * z
    h = (1.0 - l) * img + l * n
    return bn(h, params["g3"], params["b3"])


if __name__ == "__main__":
    B, Dimg, Dmeta = 8, 1024, 64   # batch, img feature dim, meta feature dim

    key = jax.random.PRNGKey(0)
    k_img, k_meta, k_wf, k_bf, k_wg, k_bg = jax.random.split(key, 6)

    img = jax.random.normal(k_img, (B, Dimg), dtype=jnp.float32)
    meta = jax.random.normal(k_meta, (B, Dmeta), dtype=jnp.float32)

    # nn.Linear default init: U(-1/sqrt(in), 1/sqrt(in)); weights stored
    # transposed as [Dmeta, Dimg] so the kernel does row-major meta @ W.
    bound = 1.0 / jnp.sqrt(jnp.float32(Dmeta))
    params = {
        "wf": jax.random.uniform(k_wf, (Dmeta, Dimg), jnp.float32, -bound, bound),
        "bf": jax.random.uniform(k_bf, (1, Dimg), jnp.float32, -bound, bound),
        "wg": jax.random.uniform(k_wg, (Dmeta, Dimg), jnp.float32, -bound, bound),
        "bg": jax.random.uniform(k_bg, (1, Dimg), jnp.float32, -bound, bound),
        # BatchNorm1d affine params (torch defaults: gamma=1, beta=0)
        "g1": jnp.ones((1, Dimg), jnp.float32), "b1": jnp.zeros((1, Dimg), jnp.float32),
        "g2": jnp.ones((1, Dimg), jnp.float32), "b2": jnp.zeros((1, Dimg), jnp.float32),
        "g3": jnp.ones((1, Dimg), jnp.float32), "b3": jnp.zeros((1, Dimg), jnp.float32),
    }

    tn = _choose_tn(Dimg)                 # 512 -> grid=(2,), lane-dense tiles
    wfg, vecs = pack_params(params, tn=tn)   # pack once, reuse every call

    out = metacaru_forward(img, meta, wfg, vecs, tn=tn)
    out = jax.block_until_ready(out)

    ref = reference_forward(img, meta, params)
    assert out.shape == (B, Dimg)
    assert jnp.allclose(out, ref, atol=1e-4, rtol=1e-4), "kernel mismatch vs reference"

    print("KERNEL_OK")
</pallas_src>

<mosaic_0001>
module attributes {stable_mosaic.version = 11 : i64} {
  func.func @metacaru_kernel(%arg0: i32, %arg1: memref<8x64xf32, #tpu.memory_space<vmem>>, %arg2: memref<8x512xf32, #tpu.memory_space<vmem>>, %arg3: memref<64x1024xf32, #tpu.memory_space<vmem>>, %arg4: memref<8x1024xf32, #tpu.memory_space<vmem>>, %arg5: memref<8x512xf32, #tpu.memory_space<vmem>>) attributes {dimension_semantics = [#tpu.dimension_semantics<parallel>], iteration_bounds = array<i64: 2>, scalar_prefetch = 0 : i64, scratch_operands = 0 : i64, tpu.core_type = #tpu.core_type<tc>, window_params = [{pipeline_mode = #tpu.pipeline_mode<synchronous>, transform_indices = @transform_0, window_bounds = array<i64: 8, 64>}, {transform_indices = @transform_1, window_bounds = array<i64: 8, 512>}, {transform_indices = @transform_2, window_bounds = array<i64: 64, 1024>}, {transform_indices = @transform_3, window_bounds = array<i64: 8, 1024>}, {transform_indices = @transform_4, window_bounds = array<i64: 8, 512>}]} {
    %c0 = arith.constant 0 : index
    %c0_0 = arith.constant 0 : index
    %0 = vector.load %arg1[%c0, %c0_0] : memref<8x64xf32, #tpu.memory_space<vmem>>, vector<8x64xf32>
    %c0_1 = arith.constant 0 : index
    %c0_2 = arith.constant 0 : index
    %1 = vector.load %arg2[%c0_1, %c0_2] : memref<8x512xf32, #tpu.memory_space<vmem>>, vector<8x512xf32>
    %c0_3 = arith.constant 0 : index
    %c0_4 = arith.constant 0 : index
    %2 = vector.load %arg4[%c0_3, %c0_4] : memref<8x1024xf32, #tpu.memory_space<vmem>>, vector<1x1024xf32>
    %c1 = arith.constant 1 : index
    %c0_5 = arith.constant 0 : index
    %3 = vector.load %arg4[%c1, %c0_5] : memref<8x1024xf32, #tpu.memory_space<vmem>>, vector<1x1024xf32>
    %c2 = arith.constant 2 : index
    %c0_6 = arith.constant 0 : index
    %4 = vector.load %arg4[%c2, %c0_6] : memref<8x1024xf32, #tpu.memory_space<vmem>>, vector<1x1024xf32>
    %c3 = arith.constant 3 : index
    %c0_7 = arith.constant 0 : index
    %5 = vector.load %arg4[%c3, %c0_7] : memref<8x1024xf32, #tpu.memory_space<vmem>>, vector<1x512xf32>
    %c4 = arith.constant 4 : index
    %c0_8 = arith.constant 0 : index
    %6 = vector.load %arg4[%c4, %c0_8] : memref<8x1024xf32, #tpu.memory_space<vmem>>, vector<1x512xf32>
    %c0_9 = arith.constant 0 : index
    %c0_10 = arith.constant 0 : index
    %7 = vector.load %arg3[%c0_9, %c0_10] : memref<64x1024xf32, #tpu.memory_space<vmem>>, vector<64x1024xf32>
    %cst = arith.constant dense<0.000000e+00> : vector<8x1024xf32>
    %8 = tpu.matmul %0, %7, %cst {dimension_numbers = #tpu.dot_dimension_numbers<[1], [0], [0], [1], [0, 0, 1, 1], [], []>} : vector<8x64xf32>, vector<64x1024xf32>, vector<8x1024xf32> -> vector<8x1024xf32>
    %9 = vector.broadcast %2 : vector<1x1024xf32> to vector<8x1024xf32>
    %10 = arith.addf %8, %9 : vector<8x1024xf32>
    %cst_11 = arith.constant dense<0.000000e+00> : vector<1024xf32>
    %11 = vector.multi_reduction <add>, %10, %cst_11 [0] : vector<8x1024xf32> to vector<1024xf32>
    %12 = vector.shape_cast %11 : vector<1024xf32> to vector<1x1024xf32>
    %cst_12 = arith.constant 8.000000e+00 : f32
    %13 = vector.broadcast %cst_12 : f32 to vector<1x1024xf32>
    %14 = arith.divf %12, %13 : vector<1x1024xf32>
    %15 = vector.broadcast %14 : vector<1x1024xf32> to vector<8x1024xf32>
    %16 = arith.subf %10, %15 : vector<8x1024xf32>
    %17 = arith.mulf %16, %16 : vector<8x1024xf32>
    %cst_13 = arith.constant dense<0.000000e+00> : vector<1024xf32>
    %18 = vector.multi_reduction <add>, %17, %cst_13 [0] : vector<8x1024xf32> to vector<1024xf32>
    %19 = vector.shape_cast %18 : vector<1024xf32> to vector<1x1024xf32>
    %cst_14 = arith.constant 8.000000e+00 : f32
    %20 = vector.broadcast %cst_14 : f32 to vector<1x1024xf32>
    %21 = arith.divf %19, %20 : vector<1x1024xf32>
    %cst_15 = arith.constant 9.99999974E-6 : f32
    %22 = vector.broadcast %cst_15 : f32 to vector<1x1024xf32>
    %23 = arith.addf %21, %22 : vector<1x1024xf32>
    %24 = math.rsqrt %23 : vector<1x1024xf32>
    %25 = vector.broadcast %24 : vector<1x1024xf32> to vector<8x1024xf32>
    %26 = arith.mulf %16, %25 : vector<8x1024xf32>
    %27 = vector.broadcast %3 : vector<1x1024xf32> to vector<8x1024xf32>
    %28 = arith.mulf %27, %26 : vector<8x1024xf32>
    %29 = vector.broadcast %4 : vector<1x1024xf32> to vector<8x1024xf32>
    %30 = arith.addf %28, %29 : vector<8x1024xf32>
    %31 = vector.extract_strided_slice %30 {offsets = [0, 0], sizes = [8, 512], strides = [1, 1]} : vector<8x1024xf32> to vector<8x512xf32>
    %32 = vector.extract_strided_slice %30 {offsets = [0, 512], sizes = [8, 512], strides = [1, 1]} : vector<8x1024xf32> to vector<8x512xf32>
    %33 = arith.addf %1, %31 : vector<8x512xf32>
    %34 = math.tanh %33 : vector<8x512xf32>
    %35 = arith.addf %32, %1 : vector<8x512xf32>
    %36 = arith.negf %35 : vector<8x512xf32>
    %37 = math.exp %36 : vector<8x512xf32>
    %cst_16 = arith.constant 1.000000e+00 : f32
    %38 = vector.broadcast %cst_16 : f32 to vector<8x512xf32>
    %39 = arith.addf %38, %37 : vector<8x512xf32>
    %40 = arith.divf %38, %39 : vector<8x512xf32>
    %41 = arith.negf %31 : vector<8x512xf32>
    %42 = math.exp %41 : vector<8x512xf32>
    %cst_17 = arith.constant 1.000000e+00 : f32
    %43 = vector.broadcast %cst_17 : f32 to vector<8x512xf32>
    %44 = arith.addf %43, %42 : vector<8x512xf32>
    %45 = arith.divf %43, %44 : vector<8x512xf32>
    %46 = arith.mulf %45, %40 : vector<8x512xf32>
    %cst_18 = arith.constant 1.000000e+00 : f32
    %47 = vector.broadcast %cst_18 : f32 to vector<8x512xf32>
    %48 = arith.subf %47, %46 : vector<8x512xf32>
    %49 = arith.mulf %48, %1 : vector<8x512xf32>
    %50 = arith.mulf %46, %34 : vector<8x512xf32>
    %51 = arith.addf %49, %50 : vector<8x512xf32>
    %cst_19 = arith.constant dense<0.000000e+00> : vector<512xf32>
    %52 = vector.multi_reduction <add>, %51, %cst_19 [0] : vector<8x512xf32> to vector<512xf32>
    %53 = vector.shape_cast %52 : vector<512xf32> to vector<1x512xf32>
    %cst_20 = arith.constant 8.000000e+00 : f32
    %54 = vector.broadcast %cst_20 : f32 to vector<1x512xf32>
    %55 = arith.divf %53, %54 : vector<1x512xf32>
    %56 = vector.broadcast %55 : vector<1x512xf32> to vector<8x512xf32>
    %57 = arith.subf %51, %56 : vector<8x512xf32>
    %58 = arith.mulf %57, %57 : vector<8x512xf32>
    %cst_21 = arith.constant dense<0.000000e+00> : vector<512xf32>
    %59 = vector.multi_reduction <add>, %58, %cst_21 [0] : vector<8x512xf32> to vector<512xf32>
    %60 = vector.shape_cast %59 : vector<512xf32> to vector<1x512xf32>
    %cst_22 = arith.constant 8.000000e+00 : f32
    %61 = vector.broadcast %cst_22 : f32 to vector<1x512xf32>
    %62 = arith.divf %60, %61 : vector<1x512xf32>
    %cst_23 = arith.constant 9.99999974E-6 : f32
    %63 = vector.broadcast %cst_23 : f32 to vector<1x512xf32>
    %64 = arith.addf %62, %63 : vector<1x512xf32>
    %65 = math.rsqrt %64 : vector<1x512xf32>
    %66 = vector.broadcast %65 : vector<1x512xf32> to vector<8x512xf32>
    %67 = arith.mulf %57, %66 : vector<8x512xf32>
    %68 = vector.broadcast %5 : vector<1x512xf32> to vector<8x512xf32>
    %69 = arith.mulf %68, %67 : vector<8x512xf32>
    %70 = vector.broadcast %6 : vector<1x512xf32> to vector<8x512xf32>
    %71 = arith.addf %69, %70 : vector<8x512xf32>
    %c0_24 = arith.constant 0 : index
    %c0_25 = arith.constant 0 : index
    %72 = vector.load %arg5[%c0_24, %c0_25] : memref<8x512xf32, #tpu.memory_space<vmem>>, vector<8x512xf32>
    tpu.vector_store %arg5[%c0_24, %c0_25], %71 {strides = array<i32>} : memref<8x512xf32, #tpu.memory_space<vmem>>, vector<8x512xf32>,
    return
  }
  func.func @transform_0(%arg0: i32) -> (i32, i32) {
    %c0_i32 = arith.constant 0 : i32
    %c0_i32_0 = arith.constant 0 : i32
    %c0_i32_1 = arith.constant 0 : i32
    return %c0_i32, %c0_i32_0 : i32, i32
  }
  func.func @transform_1(%arg0: i32) -> (i32, i32) {
    %c0_i32 = arith.constant 0 : i32
    %c0_i32_0 = arith.constant 0 : i32
    return %c0_i32, %arg0 : i32, i32
  }
  func.func @transform_2(%arg0: i32) -> (i32, i32) {
    %c0_i32 = arith.constant 0 : i32
    %c0_i32_0 = arith.constant 0 : i32
    return %c0_i32, %arg0 : i32, i32
  }
  func.func @transform_3(%arg0: i32) -> (i32, i32) {
    %c0_i32 = arith.constant 0 : i32
    %c0_i32_0 = arith.constant 0 : i32
    return %c0_i32, %arg0 : i32, i32
  }
  func.func @transform_4(%arg0: i32) -> (i32, i32) {
    %c0_i32 = arith.constant 0 : i32
    %c0_i32_0 = arith.constant 0 : i32
    return %c0_i32, %arg0 : i32, i32
  }
}

</mosaic_0001>

<bundles_post_ra>
// kernel: tpu_custom_call.1
= control target key start
LH: loop header
LB: loop body
LE: loop exit
PB: predicated region body
PF: predicated region fallthrough
CT: control target
= control target key end

     0   :  { %s2215_s0 = inlined_call_operand.hbm [shape: f32[8,64], index: 0, kind: input, shape index: {}]   ;;  %s2216_s1 = inlined_call_operand.hbm [shape: f32[8,1024], index: 1, kind: input, shape index: {}]   ;;  %s2217_s2 = inlined_call_operand.hbm [shape: f32[64,2048], index: 2, kind: input, shape index: {}]   ;;  %s2218_s3 = inlined_call_operand.hbm [shape: f32[8,2048], index: 3, kind: input, shape index: {}]   ;;  %s2219_s4 = inlined_call_operand.hbm [shape: f32[8,1024], index: 4, kind: output, shape index: {}]  }
   0x1   :  { %2227 = sst [smem:[#allocation15_spill]] %s2216_s1 }
   0x2   :  { %9 = vsyncpa [#allocation3], 0 }
   0x3   :  { %10 = vsyncpa [#allocation6], 0 }
   0x4   :  { %12 = vsyncpa [#allocation6 + $0x1], 0 }
   0x5   :  { %13 = vsyncpa [#allocation9], 0 }
   0x6   :  { %15 = vsyncpa [#allocation9 + $0x1], 0 }
   0x7   :  { %16 = vsyncpa [#allocation4], 0 }
   0x8   :  { %18 = vsyncpa [#allocation4 + $0x1], 0  ;;  %s1719_s15 = smov 0   ;;  %s1721_s16 = smov 0  }
   0x9   :  { %s1723_s17 = smov 0   ;;  %s1725_s18 = smov 0  }
   0xa LB: > { %s1740_s19 = sadd.s32 1, %s1683_s18   ;;  %s52_s20 = sadd.s32 1, %s1679_s17  ;;  %s1683_s18 = sphi %s1725_s18, %s2249_s18   ;;  %s1679_s17 = sphi %s1723_s17, %s2248_s17   ;;  %s1675_s16 = sphi %s1721_s16, %s2247_s16   ;;  %s1671_s15 = sphi %s1719_s15, %s2246_s15  }
   0xb   : > { %s49_s21 = ssub.s32 %s1683_s18, %s1740_s19  ;;  %p2220_p0 = scmp.ne.s32.totalorder %s1679_s17, %s1675_s16 }
   0xc   : > { %p50_p1 = scmp.eq.s32.totalorder %s49_s21, 0  ;;  %p60_p2 = scmp.eq.s32.totalorder %s1683_s18, 0 }
   0xd   : > { %p1397_p4 = scmp.lt.s32.totalorder %s1683_s18, 2  ;;  %s178_s23 = sand.u32 1, %s1683_s18  }
   0xe   : > { %s1751_s22 = scalar_select %p50_p1, %s1679_s17, %s52_s20  }
   0xf   : > { %p61_p5 = por %p60_p2, %p2220_p0  ;;  %s1758_s24 = sand.u32 1, %s1679_s17  }
  0x10   : > { %s1324_s25 = sshll.u32 %s1758_s24, 5  ;;  %s1362_s26 = sshll.u32 %s1683_s18, 9 }
  0x11   : > { %s2228_s1 = sld [smem:[#allocation15_spill]]  ;;  %s182_s30 = scalar_lea.vmem [#allocation5], %s1324_s25 }
  0x12   : > { %s190_s5 = sshll.u32 %s182_s30, 4  ;;  %p1767_p6 = pnand %p1397_p4, %p61_p5  ;;  %s191_s5 = int_to_ptr.vmem [resolvable:$true] %s190_s5 }
  0x13   : > { %s1327_s7 = sshll.u32 %s1758_s24, 9  ;;  %s1772_s8 = scalar_lea.sflag [#allocation6], %s178_s23 }
  0x14   : > { %p1778_p8 = pneg %p1767_p6 }
  0x17   : > { %s1765_s29 = scalar_lea.hbm %s2228_s1, %s1362_s26  ;;  %s1506_s13 = scalar_lea.hbm %s2228_s1, 1024 }
  0x18   : > { %s1501_s9 = scalar_lea.hbm %s1765_s29, 512  ;;  %p1507_p11 = scmp.lt.s32.totalorder %s1765_s29, %s2228_s1 }
  0x19   : > { %p1502_p7 = scmp.ne.s32.totalorder %s1765_s29, %s1501_s9  ;;  %p1508_p12 = scmp.lt.s32.totalorder %s1506_s13, %s1501_s9 }
  0x1b   : > { %p1504_p9 = pnand %p1778_p8, %p1502_p7  ;;  %p1509_p13 = por %p1508_p12, %p1507_p11 }
  0x1d   : > { %p1505_p10 = pneg %p1504_p9 }
  0x1f   : > { %p1510_p1 = pnand %p1509_p13, %p1505_p10 }
  0x21   : > { %1513 = shalt.err (!%p1510_p1)
}
  0x22   : > { %s1514_s21 = scalar_lea.vmem %s191_s5, 512  ;;  %s1685_s23 = smov [#allocation5]  }
  0x23   : > { %p1515_p2 = scmp.ne.s32.totalorder %s191_s5, %s1514_s21  ;;  %s1519_s25 = sshll.u32 %s1685_s23, 4  ;;  %s1520_s25 = int_to_ptr.vmem [resolvable:$false] %s1519_s25 }
  0x24   : > { %s1521_s26 = scalar_lea.vmem %s1520_s25, 1024  ;;  %p1522_p7 = scmp.lt.s32.totalorder %s191_s5, %s1520_s25 }
  0x25   : > { %p1517_p4 = pnand %p1515_p2, %p1778_p8  ;;  %p1523_p9 = scmp.lt.s32.totalorder %s1521_s26, %s1514_s21 }
  0x27   : > { %p1518_p5 = pneg %p1517_p4  ;;  %p1524_p3 = por %p1523_p9, %p1522_p7 }
  0x29   : > { %p1525_p0 = pnand %p1524_p3, %p1518_p5 }
  0x2b   : > { %1528 = shalt.err (!%p1525_p0)
}
  0x2c   : > { %1385 = dma.hbm_to_vmem [thread:$0]  (!%p1767_p6), %s1765_s29, 512, %s191_s5, %s1772_s8  }
  0x2d   : > { %s201_s27 = scalar_lea.vmem [#allocation7], %s1327_s7  ;;  %s1800_s30 = sadd.s32 4294967295, %s1683_s18  }
  0x2e   : > { %s208_s28 = sshll.u32 %s201_s27, 4  ;;  %s1320_s9 = sadd.s32 4294967294, %s1683_s18   ;;  %s1797_s28 = int_to_ptr.vmem [resolvable:$true] %s208_s28 }
  0x2f   : > { %p65_p0 = scmp.ne.s32.totalorder %s1675_s16, %s1671_s15  ;;  %p2223_p3 = scmp.eq.s32.totalorder %s1800_s30, 0 }
  0x30   : > { %p141_p10 = scmp.eq.s32.totalorder %s1800_s30, 1  ;;  %p147_p11 = scmp.eq.s32.totalorder %s1320_s9, 1 }
  0x31   : > { %p1809_p12 = por %p2223_p3, %p65_p0  ;;  %p1321_p13 = scmp.ge.s32.totalorder %s1683_s18, 1 }
  0x32   : > { %p2232_p1 = scmp.ne.s32.totalorder %s1679_s17, %s1675_s16  ;;  %p1821_p4 = por %p147_p11, %p65_p0 }
  0x33   : > { %s2231_s29 = scalar_select %p1809_p12, 1, 0 }
  0x34   : > { %p1817_p2 = por %p141_p10, %p2232_p1  ;;  %p154_p5 = scmp.lt.s32.totalorder %s1683_s18, 3 }
  0x35   : > { %s2234_s7 = scalar_select %p1821_p4, 1, 0 }
  0x36   : > { %s2233_s5 = scalar_select %p1817_p2, 1, 0 }
  0x37   : > { %s2222_s11 = sshll.u32 %s1683_s18, 10  ;;  %p1827_p7 = pnand %p1321_p13, %p154_p5 }
  0x38   : > { %s1686_s13 = smov [#allocation2]   ;;  %s1838_s23 = scalar_lea.hbm %s2217_s2, %s2222_s11 }
  0x39   : > { %s2235_s12 = scalar_select %p1827_p7, 1, 0 }
  0x3a   : > { %s167_s14 = sshll.u32 %s1686_s13, 4  ;;  %p1378_p9 = pneg %p1827_p7  ;;  %s1831_s14 = int_to_ptr.vmem [resolvable:$true] %s167_s14 }
  0x3b   : > { %s1529_s26 = scalar_lea.hbm %s1838_s23, 8192  ;;  %s1534_s13 = scalar_lea.hbm %s2217_s2, 16384 }
  0x3c   : > { %p1844_p0 = pnand %p1378_p9, %p2223_p3  ;;  %p1530_p10 = scmp.ne.s32.totalorder %s1838_s23, %s1529_s26 }
  0x3d   : > { %p1535_p1 = scmp.lt.s32.totalorder %s1838_s23, %s2217_s2  ;;  %p1536_p5 = scmp.lt.s32.totalorder %s1534_s13, %s1529_s26 }
  0x3e   : > { %s2236_s25 = scalar_select %p1844_p0, 1, 0 }
  0x3f   : > { %p1532_p11 = pnand %p1530_p10, %p1778_p8  ;;  %p1537_p4 = por %p1536_p5, %p1535_p1 }
  0x41   : > { %p1533_p13 = pneg %p1532_p11 }
  0x43   : > { %p1538_p2 = pnand %p1537_p4, %p1533_p13 }
  0x45   : > { %1541 = shalt.err (!%p1538_p2)
}
  0x46   : > { %s1542_s11 = scalar_lea.vmem %s1797_s28, 8192  ;;  %s1687_s1 = smov [#allocation7]  }
  0x47   : > { %p1543_p9 = scmp.ne.s32.totalorder %s1797_s28, %s1542_s11  ;;  %s1547_s27 = sshll.u32 %s1687_s1, 4  ;;  %s1548_s27 = int_to_ptr.vmem [resolvable:$false] %s1547_s27 }
  0x48   : > { %s1549_s9 = scalar_lea.vmem %s1548_s27, 16384  ;;  %p1550_p3 = scmp.lt.s32.totalorder %s1797_s28, %s1548_s27 }
  0x49   : > { %p1545_p10 = pnand %p1543_p9, %p1778_p8  ;;  %p1551_p12 = scmp.lt.s32.totalorder %s1549_s9, %s1542_s11 }
  0x4b   : > { %p1546_p11 = pneg %p1545_p10  ;;  %p1552_p7 = por %p1551_p12, %p1550_p3 }
  0x4d   : > { %p1553_p0 = pnand %p1552_p7, %p1546_p11 }
  0x4f   : > { %1556 = shalt.err (!%p1553_p0)
}
  0x50   : > { %s1688_s26 = smov 2048   ;;  %s1689_s13 = smov 1024  }
  0x51   : > { %s1690_s20 = smov 64   ;;  %s1330_s1 = sshll.u32 %s1758_s24, 6 }
  0x52   : > { %1388 = dma.hbm_to_vmem [thread:$0]  (!%p1767_p6), %s1838_s23, 8192, %s1797_s28, %s1772_s8, %s1688_s26, %s1689_s13, %s1690_s20  }
  0x53   : > { %p2237_p2 = scmp.ne.s32.totalorder %s2236_s25, 0  ;;  %s1568_s11 = scalar_lea.vmem %s1831_s14, 128 }
  0x54   : > { %p1569_p3 = scmp.ne.s32.totalorder %s1831_s14, %s1568_s11  ;;  %p1576_p0 = scmp.lt.s32.totalorder %s1831_s14, %s1831_s14 }
  0x55   : > { %p1559_p4 = pneg %p2237_p2  ;;  %p1577_p13 = scmp.lt.s32.totalorder %s1568_s11, %s1568_s11 }
  0x57   : > { %p1571_p12 = pnand %p1569_p3, %p1559_p4  ;;  %p1578_p1 = por %p1577_p13, %p1576_p0 }
  0x59   : > { %p1572_p7 = pneg %p1571_p12 }
  0x5b   : > { %p1579_p5 = pnand %p1578_p1, %p1572_p7 }
  0x5d   : > { %1582 = shalt.err (!%p1579_p5)
}
  0x5e   : > { %1381 = dma.hbm_to_vmem [thread:$0]  (!%p2237_p2), %s2215_s0, 128, %s1831_s14, [#allocation3]  }
  0x5f   : > { %s2238_s8 = sshll.u32 %s1683_s18, 10  ;;  %s222_s26 = scalar_lea.vmem [#allocation8], %s1330_s1 }
  0x60   : > { %s1887_s9 = scalar_lea.hbm %s2218_s3, %s2238_s8  ;;  %s230_s13 = sshll.u32 %s222_s26, 4  ;;  %s231_s13 = int_to_ptr.vmem [resolvable:$true] %s230_s13 }
  0x61   : > { %s219_s25 = scalar_lea.sflag [#allocation9], %s1758_s24  ;;  %s1583_s20 = scalar_lea.hbm %s1887_s9, 1024 }
  0x62   : > { %p1584_p9 = scmp.ne.s32.totalorder %s1887_s9, %s1583_s20  ;;  %s1588_s21 = scalar_lea.hbm %s2218_s3, 2048 }
  0x63   : > { %p1589_p2 = scmp.lt.s32.totalorder %s1887_s9, %s2218_s3  ;;  %p1590_p4 = scmp.lt.s32.totalorder %s1588_s21, %s1583_s20 }
  0x64   : > { %p1586_p10 = pnand %p1584_p9, %p1778_p8 }
  0x65   : > { %p1591_p3 = por %p1590_p4, %p1589_p2 }
  0x66   : > { %p1587_p11 = pneg %p1586_p10 }
  0x68   : > { %p1592_p12 = pnand %p1591_p3, %p1587_p11 }
  0x6a   : > { %1595 = shalt.err (!%p1592_p12)
}
  0x6b   : > { %s1596_s1 = scalar_lea.vmem %s231_s13, 1024  ;;  %s1691_s24 = smov [#allocation8]  }
  0x6c   : > { %p1597_p7 = scmp.ne.s32.totalorder %s231_s13, %s1596_s1  ;;  %s1601_s8 = sshll.u32 %s1691_s24, 4  ;;  %s1602_s8 = int_to_ptr.vmem [resolvable:$false] %s1601_s8 }
  0x6d   : > { %s1603_s23 = scalar_lea.vmem %s1602_s8, 2048  ;;  %p1604_p1 = scmp.lt.s32.totalorder %s231_s13, %s1602_s8 }
  0x6e   : > { %p1599_p0 = pnand %p1597_p7, %p1778_p8  ;;  %p1605_p5 = scmp.lt.s32.totalorder %s1603_s23, %s1596_s1 }
  0x70   : > { %p1600_p13 = pneg %p1599_p0  ;;  %p1606_p9 = por %p1605_p5, %p1604_p1 }
  0x72   : > { %p1607_p10 = pnand %p1606_p9, %p1600_p13 }
  0x74   : > { %1610 = shalt.err (!%p1607_p10)
}
  0x75   : > { %1391 = dma.hbm_to_vmem [thread:$0]  (!%p1767_p6), %s1887_s9, 1024, %s231_s13, %s219_s25  }
  0x76   : > { %p2239_p11 = scmp.ne.s32.totalorder %s2235_s12, 0 }
  0x77   : > { %p2240_p2 = scmp.eq.s32.totalorder (!%p2239_p11), %s1800_s30, 0 }
  0x78   : > { %239 = sbr.rel (%p2239_p11) target bundleno = 538 (0x21a), region = 36 }
  0x7d   : > { %1654 = dma.done.wait (%p2240_p2), [#allocation3], 128   ;;  %p2241_p8 = pmov %p2240_p2 }
  0x7e   : > { %s245_s10 = sand.u32 1, %s1800_s30   ;;  %s1914_s26 = sand.u32 1, %s1675_s16  }
  0x7f   : > { %1656 = vsyncadd (%p2241_p8), [#allocation3], 4294967168  ;;  %s1335_s6 = sshll.u32 %s1914_s26, 5  ;;  %s246_s20 = scalar_lea.sflag [#allocation6], %s245_s10 }
  0x80   : > { %s1919_s9 = scalar_lea.vmem [#allocation5], %s1335_s6  ;;  %p2242_p6 = scmp.ne.s32.totalorder %s2231_s29, 0 }
  0x82   : > { %1658 = dma.done.wait (%p2242_p6), %s246_s20, 8704  }
  0x83   : > { %1660 = vsyncadd (%p2242_p6), %s246_s20, 4294958592  ;;  %s1336_s12 = sshll.u32 %s1914_s26, 9  ;;  %s1337_s13 = sshll.u32 %s1914_s26, 6 }
  0x84   : > { %s1927_s25 = scalar_lea.vmem [#allocation7], %s1336_s12  ;;  %s264_s11 = scalar_lea.sflag [#allocation9], %s1914_s26 }
  0x85   : > { %s1930_s14 = scalar_lea.vmem [#allocation8], %s1337_s13 }
  0x86   : > { %1662 = dma.done.wait (%p2242_p6), %s264_s11, 1024  }
  0x87   : > { %1664 = vsyncadd (%p2242_p6), %s264_s11, 4294966272  ;;  %v1692_v0 = vmov 0.0   ;;  %v383_v1 = vld [vmem:[%s1927_s25 + $0x1c8] sm:$0xff]  ;;  %v385_v2 = vld [vmem:[%s1927_s25 + $0x1d8] sm:$0xff]  ;;  %vm431_vm0 = vcmask 523264   ;;  %s301_s29 = scalar_lea.vmem [#allocation10], %s1335_s6 }
  0x88   : > { %499 = vmatprep.mubr.f32.mxu0 %v1692_v0  ;;  %570 = vmatprep.mubr.f32.mxu1 %v1692_v0  ;;  %v382_v3 = vld [vmem:[%s1927_s25 + $0x1c0] sm:$0xff]  ;;  %v384_v4 = vld [vmem:[%s1927_s25 + $0x1d0] sm:$0xff]  ;;  %v375_v5 = vld [vmem:[%s1927_s25 + $0x188] sm:$0xff]  ;;  %s1365_s21 = sshll.u32 %s1800_s30, 9  ;;  %s1195_s27 = sshll.u32 %s301_s29, 4  ;;  %s1196_s27 = int_to_ptr.vmem [resolvable:$true] %s1195_s27 }
  0x89   : > { %451 = vmatprep.subr.mxu0 %v383_v1  ;;  %522 = vmatprep.subr.mxu1 %v385_v2  ;;  %v377_v6 = vld [vmem:[%s1927_s25 + $0x198] sm:$0xff]  ;;  %v374_v7 = vld [vmem:[%s1927_s25 + $0x180] sm:$0xff]  ;;  %v376_v8 = vld [vmem:[%s1927_s25 + $0x190] sm:$0xff]  ;;  %s2178_s24 = scalar_lea.hbm %s2219_s4, %s1365_s21  ;;  %s1181_s8 = scalar_lea.sflag [#allocation4], %s1914_s26 }
  0x8a   : > { %452 = vmatpush1.msra.mxu0 %v382_v3  ;;  %523 = vmatpush1.msra.mxu1 %v384_v4  ;;  %v367_v9 = vld [vmem:[%s1927_s25 + $0x148] sm:$0xff]  ;;  %v369_v10 = vld [vmem:[%s1927_s25 + $0x158] sm:$0xff]  ;;  %v366_v11 = vld [vmem:[%s1927_s25 + $0x140] sm:$0xff]  ;;  %v391_v3 = vlaneseq  ;;  %s1611_s23 = scalar_lea.vmem %s1196_s27, 512  ;;  %p2243_p3 = scmp.ne.s32.totalorder %s2233_s5, 0 }
  0x8b   : > { %453 = vmatprep.subr.mxu0 %v375_v5  ;;  %524 = vmatprep.subr.mxu1 %v377_v6  ;;  %v368_v12 = vld [vmem:[%s1927_s25 + $0x150] sm:$0xff]  ;;  %v359_v13 = vld [vmem:[%s1927_s25 + $0x108] sm:$0xff]  ;;  %v361_v14 = vld [vmem:[%s1927_s25 + $0x118] sm:$0xff]  ;;  %p1612_p4 = scmp.ne.s32.totalorder %s1196_s27, %s1611_s23  ;;  %s1693_s10 = smov [#allocation10]  }
  0x8c   : > { %454 = vmatpush1.msra.mxu0 %v374_v7  ;;  %525 = vmatpush1.msra.mxu1 %v376_v8  ;;  %v358_v15 = vld [vmem:[%s1927_s25 + $0x100] sm:$0xff]  ;;  %v360_v16 = vld [vmem:[%s1927_s25 + $0x110] sm:$0xff]  ;;  %v351_v17 = vld [vmem:[%s1927_s25 + $0xc8] sm:$0xff]  ;;  %v392_v4 = vshrl.u32 %v391_v3, 7  ;;  %s1615_s30 = sshll.u32 %s1693_s10, 4  ;;  %s1616_s30 = int_to_ptr.vmem [resolvable:$false] %s1615_s30 }
  0x8d   : > { %455 = vmatprep.subr.mxu0 %v367_v9  ;;  %526 = vmatprep.subr.mxu1 %v369_v10  ;;  %v353_v18 = vld [vmem:[%s1927_s25 + $0xd8] sm:$0xff]  ;;  %v350_v19 = vld [vmem:[%s1927_s25 + $0xc0] sm:$0xff]  ;;  %v352_v20 = vld [vmem:[%s1927_s25 + $0xd0] sm:$0xff]  ;;  %p1613_p12 = pnand %p1612_p4, %p2243_p3  ;;  %s1617_s6 = scalar_lea.vmem %s1616_s30, 1024 }
  0x8e   : > { %456 = vmatpush1.msra.mxu0 %v366_v11  ;;  %527 = vmatpush1.msra.mxu1 %v368_v12  ;;  %v343_v21 = vld [vmem:[%s1927_s25 + $0x88] sm:$0xff]  ;;  %v345_v22 = vld [vmem:[%s1927_s25 + $0x98] sm:$0xff]  ;;  %v342_v23 = vld [vmem:[%s1927_s25 + $0x80] sm:$0xff]  ;;  %v2018_v8 = vsub.s32 0, %v392_v4  ;;  %v2020_v9 = vsub.s32 2, %v392_v4  ;;  %v2022_v10 = vsub.s32 1, %v392_v4  ;;  %p1618_p0 = scmp.lt.s32.totalorder %s1196_s27, %s1616_s30  ;;  %p1619_p13 = scmp.lt.s32.totalorder %s1617_s6, %s1611_s23 }
  0x8f   : > { %457 = vmatprep.subr.mxu0 %v359_v13  ;;  %528 = vmatprep.subr.mxu1 %v361_v14  ;;  %v344_v24 = vld [vmem:[%s1927_s25 + $0x90] sm:$0xff]  ;;  %v335_v25 = vld [vmem:[%s1927_s25 + $0x48] sm:$0xff]  ;;  %v337_v26 = vld [vmem:[%s1927_s25 + $0x58] sm:$0xff]  ;;  %v2024_v11 = vsub.s32 3, %v392_v4  ;;  %p1614_p7 = pneg %p1613_p12 }
  0x90   : > { %458 = vmatpush1.msra.mxu0 %v358_v15  ;;  %529 = vmatpush1.msra.mxu1 %v360_v16  ;;  %v334_v27 = vld [vmem:[%s1927_s25 + $0x40] sm:$0xff]  ;;  %v336_v28 = vld [vmem:[%s1927_s25 + $0x50] sm:$0xff]  ;;  %v327_v29 = vld [vmem:[%s1927_s25 + $0x8] sm:$0xff]  ;;  %p1620_p1 = por %p1619_p13, %p1618_p0 }
  0x91   : > { %459 = vmatprep.subr.mxu0 %v351_v17  ;;  %530 = vmatprep.subr.mxu1 %v353_v18  ;;  %v329_v30 = vld [vmem:[%s1927_s25 + $0x18] sm:$0xff]  ;;  %v326_v31 = vld [vmem:[%s1927_s25] sm:$0xff]  ;;  %v328_v32 = vld [vmem:[%s1927_s25 + $0x10] sm:$0xff] }
  0x92   : > { %460 = vmatpush1.msra.mxu0 %v350_v19  ;;  %531 = vmatpush1.msra.mxu1 %v352_v20  ;;  %v1970_v33 = vld [vmem:[#allocation2] sm:$0xff]  ;;  %v387_v34 = vld [vmem:[%s1927_s25 + $0x1e8] sm:$0xff]  ;;  %v386_v36 = vld [vmem:[%s1927_s25 + $0x1e0] sm:$0xff]  ;;  %p1621_p5 = pnand %p1620_p1, %p1614_p7 }
  0x93   : > { %461 = vmatprep.subr.mxu0 %v343_v21  ;;  %532 = vmatprep.subr.mxu1 %v345_v22  ;;  %v389_v35 = vld [vmem:[%s1927_s25 + $0x1f8] sm:$0xff]  ;;  %v388_v37 = vld [vmem:[%s1927_s25 + $0x1f0] sm:$0xff]  ;;  %v379_v38 = vld [vmem:[%s1927_s25 + $0x1a8] sm:$0xff] }
  0x94   : > { %462 = vmatpush1.msra.mxu0 %v342_v23  ;;  %533 = vmatpush1.msra.mxu1 %v344_v24  ;;  %v381_v39 = vld [vmem:[%s1927_s25 + $0x1b8] sm:$0xff]  ;;  %v378_v40 = vld [vmem:[%s1927_s25 + $0x1a0] sm:$0xff]  ;;  %v380_v41 = vld [vmem:[%s1927_s25 + $0x1b0] sm:$0xff] }
  0x95   : > { %463 = vmatprep.subr.mxu0 %v335_v25  ;;  %534 = vmatprep.subr.mxu1 %v337_v26  ;;  %v371_v42 = vld [vmem:[%s1927_s25 + $0x168] sm:$0xff]  ;;  %v373_v43 = vld [vmem:[%s1927_s25 + $0x178] sm:$0xff]  ;;  %v370_v44 = vld [vmem:[%s1927_s25 + $0x160] sm:$0xff] }
  0x96   : > { %464 = vmatpush1.msra.mxu0 %v334_v27  ;;  %535 = vmatpush1.msra.mxu1 %v336_v28  ;;  %v372_v45 = vld [vmem:[%s1927_s25 + $0x170] sm:$0xff]  ;;  %v363_v46 = vld [vmem:[%s1927_s25 + $0x128] sm:$0xff]  ;;  %v365_v47 = vld [vmem:[%s1927_s25 + $0x138] sm:$0xff] }
  0x97   : > { %465 = vmatprep.subr.mxu0 %v327_v29  ;;  %536 = vmatprep.subr.mxu1 %v329_v30  ;;  %v362_v48 = vld [vmem:[%s1927_s25 + $0x120] sm:$0xff]  ;;  %v364_v49 = vld [vmem:[%s1927_s25 + $0x130] sm:$0xff]  ;;  %v355_v50 = vld [vmem:[%s1927_s25 + $0xe8] sm:$0xff] }
  0x98   : > { %466 = vmatpush1.msra.mxu0 %v326_v31  ;;  %537 = vmatpush1.msra.mxu1 %v328_v32  ;;  %v357_v51 = vld [vmem:[%s1927_s25 + $0xf8] sm:$0xff]  ;;  %v354_v52 = vld [vmem:[%s1927_s25 + $0xe0] sm:$0xff]  ;;  %v356_v53 = vld [vmem:[%s1927_s25 + $0xf0] sm:$0xff] }
  0x99   : > { %1345 = vmatmul.mubr.msk.f32.vlgmr.msra.gmra.mxu0 %vm431_vm0, %v1970_v33  ;;  %1346 = vmatmul.mubr.msk.f32.vlgmr.msra.gmra.mxu1 %vm431_vm0, %v1970_v33  ;;  %v347_v54 = vld [vmem:[%s1927_s25 + $0xa8] sm:$0xff]  ;;  %v349_v55 = vld [vmem:[%s1927_s25 + $0xb8] sm:$0xff]  ;;  %v346_v56 = vld [vmem:[%s1927_s25 + $0xa0] sm:$0xff] }
  0x9a   : > { %593 = vmatprep.subr.mxu0 %v387_v34  ;;  %664 = vmatprep.subr.mxu1 %v389_v35  ;;  %v348_v57 = vld [vmem:[%s1927_s25 + $0xb0] sm:$0xff]  ;;  %v339_v58 = vld [vmem:[%s1927_s25 + $0x68] sm:$0xff]  ;;  %v341_v59 = vld [vmem:[%s1927_s25 + $0x78] sm:$0xff] }
  0x9b   : > { %594 = vmatpush1.msra.mxu0 %v386_v36  ;;  %665 = vmatpush1.msra.mxu1 %v388_v37  ;;  %v338_v60 = vld [vmem:[%s1927_s25 + $0x60] sm:$0xff]  ;;  %v340_v61 = vld [vmem:[%s1927_s25 + $0x70] sm:$0xff]  ;;  %v331_v62 = vld [vmem:[%s1927_s25 + $0x28] sm:$0xff] }
  0x9c   : > { %595 = vmatprep.subr.mxu0 %v379_v38  ;;  %666 = vmatprep.subr.mxu1 %v381_v39  ;;  %v333_v63 = vld [vmem:[%s1927_s25 + $0x38] sm:$0xff]  ;;  %v330_v1 = vld [vmem:[%s1927_s25 + $0x20] sm:$0xff]  ;;  %v332_v2 = vld [vmem:[%s1927_s25 + $0x30] sm:$0xff] }
  0x9d   : > { %596 = vmatpush1.msra.mxu0 %v378_v40  ;;  %667 = vmatpush1.msra.mxu1 %v380_v41  ;;  %v311_v5 = vld [vmem:[%s1930_s14] ss:$8 sm:$0xf]  ;;  %v2034_v41 = vsub.s32 4, %v392_v4 }
  0x9e   : > { %597 = vmatprep.subr.mxu0 %v371_v42  ;;  %668 = vmatprep.subr.mxu1 %v373_v43  ;;  %v312_v6 = vld [vmem:[%s1930_s14] ss:$8 sm:$0xf0]  ;;  %v2036_v42 = vsub.s32 6, %v392_v4 }
  0x9f   : > { %598 = vmatpush1.msra.mxu0 %v370_v44  ;;  %669 = vmatpush1.msra.mxu1 %v372_v45  ;;  %v2016_v7 = vor.u32 %v312_v6, %v311_v5 }
  0xa0   : > { %599 = vmatprep.subr.mxu0 %v363_v46  ;;  %670 = vmatprep.subr.mxu1 %v365_v47  ;;  %v2038_v47 = vsub.s32 5, %v392_v4 }
  0xa1   : > { %600 = vmatpush1.msra.mxu0 %v362_v48  ;;  %671 = vmatpush1.msra.mxu1 %v364_v49  ;;  %v402_v12 = vrot.slane %v2016_v7, %v2020_v9  ;;  %v398_v13 = vrot.slane %v2016_v7, %v2022_v10  ;;  %v406_v14 = vrot.slane %v2016_v7, %v2024_v11  ;;  %v2040_v48 = vsub.s32 7, %v392_v4 }
  0xa2   : > { %601 = vmatprep.subr.mxu0 %v355_v50  ;;  %672 = vmatprep.subr.mxu1 %v357_v51 }
  0xa3   : > { %602 = vmatpush1.msra.mxu0 %v354_v52  ;;  %673 = vmatpush1.msra.mxu1 %v356_v53  ;;  %v410_v53 = vrot.slane %v2016_v7, %v2034_v41 }
  0xa4   : > { %603 = vmatprep.subr.mxu0 %v347_v54  ;;  %674 = vmatprep.subr.mxu1 %v349_v55  ;;  %v418_v54 = vrot.slane %v2016_v7, %v2036_v42 }
  0xa5   : > { %604 = vmatpush1.msra.mxu0 %v346_v56  ;;  %675 = vmatpush1.msra.mxu1 %v348_v57 }
  0xa6   : > { %605 = vmatprep.subr.mxu0 %v339_v58  ;;  %676 = vmatprep.subr.mxu1 %v341_v59 }
  0xa7   : > { %606 = vmatpush1.msra.mxu0 %v338_v60  ;;  %677 = vmatpush1.msra.mxu1 %v340_v61  ;;  %v414_v61 = vrot.slane %v2016_v7, %v2038_v47 }
  0xa8   : > { %607 = vmatprep.subr.mxu0 %v331_v62  ;;  %678 = vmatprep.subr.mxu1 %v333_v63  ;;  %v422_v62 = vrot.slane %v2016_v7, %v2040_v48 }
  0xa9   : > { %608 = vmatpush1.msra.mxu0 %v330_v1  ;;  %641 = vmatprep.mubr.f32.mxu0 %v1692_v0 }
  0xaa   : > { %679 = vmatpush1.msra.mxu1 %v332_v2  ;;  %712 = vmatprep.mubr.f32.mxu1 %v1692_v0  ;;  %v394_v0 = vrot.slane %v2016_v7, %v2018_v8 }
  0xab   : > { %1347 = vmatmul.mubr.msk.f32.vlgmr.msra.gmra.mxu0 %vm431_vm0, %v1970_v33  ;;  %1348 = vmatmul.mubr.msk.f32.vlgmr.msra.gmra.mxu1 %vm431_vm0, %v1970_v33 }
 0x159   : > { %v501_v15 = vpop.f32.mrf.mxu0  ;;  %v572_v16 = vpop.f32.mrf.mxu1 }
 0x15a   : > { %v502_v17 = vadd.f32 %v501_v15, %v394_v0  ;;  %v573_v18 = vadd.f32 %v572_v16, %v402_v12 }
 0x15b   : > { %v503_v19 = vpop.f32.mrf.mxu0  ;;  %v574_v20 = vpop.f32.mrf.mxu1 }
 0x15c   : > { %v719_v21 = vrot.slane %v502_v17, 4  ;;  %v731_v22 = vrot.slane %v573_v18, 4  ;;  %v504_v23 = vadd.f32 %v503_v19, %v398_v13  ;;  %v575_v24 = vadd.f32 %v574_v20, %v406_v14 }
 0x15e   : > { %v720_v25 = vadd.f32 %v719_v21, %v502_v17  ;;  %v732_v26 = vadd.f32 %v731_v22, %v573_v18  ;;  %v725_v27 = vrot.slane %v504_v23, 4  ;;  %v737_v28 = vrot.slane %v575_v24, 4 }
 0x160   : > { %v721_v29 = vrot.slane %v720_v25, 2  ;;  %v733_v30 = vrot.slane %v732_v26, 2  ;;  %v726_v31 = vadd.f32 %v725_v27, %v504_v23  ;;  %v738_v32 = vadd.f32 %v737_v28, %v575_v24 }
 0x162   : > { %v722_v33 = vadd.f32 %v721_v29, %v720_v25  ;;  %v734_v34 = vadd.f32 %v733_v30, %v732_v26  ;;  %v727_v35 = vrot.slane %v726_v31, 2  ;;  %v739_v36 = vrot.slane %v738_v32, 2 }
 0x164   : > { %v723_v37 = vrot.slane %v722_v33, 1  ;;  %v735_v38 = vrot.slane %v734_v34, 1  ;;  %v728_v39 = vadd.f32 %v727_v35, %v726_v31  ;;  %v740_v40 = vadd.f32 %v739_v36, %v738_v32 }
 0x166   : > { %v724_v43 = vadd.f32 %v723_v37, %v722_v33  ;;  %v736_v44 = vadd.f32 %v735_v38, %v734_v34  ;;  %v729_v45 = vrot.slane %v728_v39, 1  ;;  %v741_v46 = vrot.slane %v740_v40, 1 }
 0x168   : > { %v768_v49 = vmul.f32 0.125, %v724_v43  ;;  %v770_v50 = vmul.f32 0.125, %v736_v44  ;;  %v730_v51 = vadd.f32 %v729_v45, %v728_v39  ;;  %v742_v52 = vadd.f32 %v741_v46, %v740_v40 }
 0x16a   : > { %v2046_v55 = vsub.f32 %v502_v17, %v768_v49  ;;  %v2048_v56 = vsub.f32 %v573_v18, %v770_v50  ;;  %v769_v57 = vmul.f32 0.125, %v730_v51  ;;  %v771_v58 = vmul.f32 0.125, %v742_v52 }
 0x16b   : > { %v643_v59 = vpop.f32.mrf.mxu0  ;;  %v714_v60 = vpop.f32.mrf.mxu1 }
 0x16c   : > { %v784_v63 = vmul.f32 %v2046_v55, %v2046_v55  ;;  %v786_v1 = vmul.f32 %v2048_v56, %v2048_v56  ;;  %v2058_v2 = vsub.f32 %v504_v23, %v769_v57  ;;  %v2060_v3 = vsub.f32 %v575_v24, %v771_v58 }
 0x16d   : > { %v644_v4 = vadd.f32 %v643_v59, %v410_v53  ;;  %v715_v5 = vadd.f32 %v714_v60, %v418_v54  ;;  %v645_v6 = vpop.f32.mrf.mxu0  ;;  %v716_v0 = vpop.f32.mrf.mxu1 }
 0x16e   : > { %v792_v12 = vrot.slane %v784_v63, 4  ;;  %v804_v13 = vrot.slane %v786_v1, 4  ;;  %v785_v14 = vmul.f32 %v2058_v2, %v2058_v2  ;;  %v787_v7 = vmul.f32 %v2060_v3, %v2060_v3 }
 0x16f   : > { %v743_v15 = vrot.slane %v644_v4, 4  ;;  %v755_v16 = vrot.slane %v715_v5, 4  ;;  %v646_v17 = vadd.f32 %v645_v6, %v414_v61  ;;  %v717_v18 = vadd.f32 %v716_v0, %v422_v62 }
 0x170   : > { %v793_v19 = vadd.f32 %v792_v12, %v784_v63  ;;  %v805_v20 = vadd.f32 %v804_v13, %v786_v1  ;;  %v798_v21 = vrot.slane %v785_v14, 4  ;;  %v810_v22 = vrot.slane %v787_v7, 4 }
 0x171   : > { %v744_v23 = vadd.f32 %v743_v15, %v644_v4  ;;  %v756_v24 = vadd.f32 %v755_v16, %v715_v5  ;;  %v749_v25 = vrot.slane %v646_v17, 4  ;;  %v761_v26 = vrot.slane %v717_v18, 4 }
 0x172   : > { %v794_v27 = vrot.slane %v793_v19, 2  ;;  %v806_v28 = vrot.slane %v805_v20, 2  ;;  %v799_v29 = vadd.f32 %v798_v21, %v785_v14  ;;  %v811_v30 = vadd.f32 %v810_v22, %v787_v7 }
 0x173   : > { %v745_v31 = vrot.slane %v744_v23, 2  ;;  %v757_v32 = vrot.slane %v756_v24, 2  ;;  %v750_v33 = vadd.f32 %v749_v25, %v646_v17  ;;  %v762_v34 = vadd.f32 %v761_v26, %v717_v18 }
 0x174   : > { %v795_v35 = vadd.f32 %v794_v27, %v793_v19  ;;  %v807_v36 = vadd.f32 %v806_v28, %v805_v20  ;;  %v800_v45 = vrot.slane %v799_v29, 2  ;;  %v812_v46 = vrot.slane %v811_v30, 2 }
 0x175   : > { %v746_v37 = vadd.f32 %v745_v31, %v744_v23  ;;  %v758_v38 = vadd.f32 %v757_v32, %v756_v24  ;;  %v751_v39 = vrot.slane %v750_v33, 2  ;;  %v763_v40 = vrot.slane %v762_v34, 2 }
 0x176   : > { %v796_v43 = vrot.slane %v795_v35, 1  ;;  %v808_v44 = vrot.slane %v807_v36, 1  ;;  %v801_v61 = vadd.f32 %v800_v45, %v799_v29  ;;  %v813_v62 = vadd.f32 %v812_v46, %v811_v30 }
 0x177   : > { %v747_v49 = vrot.slane %v746_v37, 1  ;;  %v759_v50 = vrot.slane %v758_v38, 1  ;;  %v752_v51 = vadd.f32 %v751_v39, %v750_v33  ;;  %v764_v52 = vadd.f32 %v763_v40, %v762_v34 }
 0x178   : > { %v797_v53 = vadd.f32 %v796_v43, %v795_v35  ;;  %v809_v60 = vadd.f32 %v808_v44, %v807_v36  ;;  %v802_v16 = vrot.slane %v801_v61, 1  ;;  %v814_v19 = vrot.slane %v813_v62, 1 }
 0x179   : > { %v748_v54 = vadd.f32 %v747_v49, %v746_v37  ;;  %v760_v57 = vadd.f32 %v759_v50, %v758_v38  ;;  %v753_v58 = vrot.slane %v752_v51, 1  ;;  %v765_v59 = vrot.slane %v764_v52, 1 }
 0x17a   : > { %v840_v12 = vmul.f32 0.125, %v797_v53  ;;  %v842_v20 = vmul.f32 0.125, %v809_v60  ;;  %v803_v27 = vadd.f32 %v802_v16, %v801_v61  ;;  %v815_v28 = vadd.f32 %v814_v19, %v813_v62  ;;  %v1339_v61 = vld [vmem:[%s1930_s14 + $0x1] ss:$8 sm:$0xf] }
 0x17b   : > { %v772_v63 = vmul.f32 0.125, %v748_v54  ;;  %v774_v1 = vmul.f32 0.125, %v760_v57  ;;  %v754_v6 = vadd.f32 %v753_v58, %v752_v51  ;;  %v766_v0 = vadd.f32 %v765_v59, %v764_v52  ;;  %v1340_v62 = vld [vmem:[%s1930_s14 + $0x1] ss:$8 sm:$0xf0] }
 0x17c   : > { %v848_v25 = vadd.f32 1e-05, %v840_v12  ;;  %v850_v30 = vadd.f32 1e-05, %v842_v20  ;;  %v841_v36 = vmul.f32 0.125, %v803_v27  ;;  %v843_v37 = vmul.f32 0.125, %v815_v28 }
 0x17d   : > { %v2066_v13 = vsub.f32 %v644_v4, %v772_v63  ;;  %v2068_v14 = vsub.f32 %v715_v5, %v774_v1  ;;  %v773_v7 = vmul.f32 0.125, %v754_v6  ;;  %v775_v15 = vmul.f32 0.125, %v766_v0  ;;  %v1342_v16 = vld [vmem:[%s1930_s14 + $0x2] ss:$8 sm:$0xf0] }
 0x17e   : > { %1437 = vrsqrt.f32 %v848_v25  ;;  %v849_v50 = vadd.f32 1e-05, %v841_v36  ;;  %v851_v52 = vadd.f32 1e-05, %v843_v37  ;;  %v2084_v0 = vor.u32 %v1340_v62, %v1339_v61 }
 0x17f   : > { %v788_v21 = vmul.f32 %v2066_v13, %v2066_v13  ;;  %v790_v22 = vmul.f32 %v2068_v14, %v2068_v14  ;;  %v2074_v23 = vsub.f32 %v646_v17, %v773_v7  ;;  %v2076_v24 = vsub.f32 %v717_v18, %v775_v15  ;;  %v1341_v15 = vld [vmem:[%s1930_s14 + $0x2] ss:$8 sm:$0xf] }
 0x180   : > { %1439 = vrsqrt.f32 %v850_v30  ;;  %v876_v25 = vrot.slane %v2084_v0, %v2018_v8  ;;  %v888_v36 = vrot.slane %v2084_v0, %v2024_v11  ;;  %v900_v37 = vrot.slane %v2084_v0, %v2036_v42 }
 0x181   : > { %v816_v4 = vrot.slane %v788_v21, 4  ;;  %v828_v26 = vrot.slane %v790_v22, 4  ;;  %v789_v5 = vmul.f32 %v2074_v23, %v2074_v23  ;;  %v791_v29 = vmul.f32 %v2076_v24, %v2076_v24 }
 0x182   : > { %1441 = vrsqrt.f32 %v849_v50 }
 0x183   : > { %v817_v31 = vadd.f32 %v816_v4, %v788_v21  ;;  %v829_v32 = vadd.f32 %v828_v26, %v790_v22  ;;  %v822_v33 = vrot.slane %v789_v5, 4  ;;  %v834_v34 = vrot.slane %v791_v29, 4 }
 0x184   : > { %1443 = vrsqrt.f32 %v851_v52  ;;  %v2088_v21 = vor.u32 %v1342_v16, %v1341_v15 }
 0x185   : > { %v818_v17 = vrot.slane %v817_v31, 2  ;;  %v830_v18 = vrot.slane %v829_v32, 2  ;;  %v823_v35 = vadd.f32 %v822_v33, %v789_v5  ;;  %v835_v38 = vadd.f32 %v834_v34, %v791_v29 }
 0x186   : > { %v884_v5 = vrot.slane %v2084_v0, %v2020_v9  ;;  %v925_v29 = vrot.slane %v2088_v21, %v2018_v8  ;;  %v945_v16 = vrot.slane %v2088_v21, %v2038_v47 }
 0x187   : > { %v819_v39 = vadd.f32 %v818_v17, %v817_v31  ;;  %v831_v40 = vadd.f32 %v830_v18, %v829_v32  ;;  %v824_v43 = vrot.slane %v823_v35, 2  ;;  %v836_v44 = vrot.slane %v835_v38, 2 }
 0x189   : > { %v820_v45 = vrot.slane %v819_v39, 1  ;;  %v832_v46 = vrot.slane %v831_v40, 1  ;;  %v825_v49 = vadd.f32 %v824_v43, %v823_v35  ;;  %v837_v51 = vadd.f32 %v836_v44, %v835_v38 }
 0x18a   : > { %v880_v35 = vrot.slane %v2084_v0, %v2022_v10 }
 0x18b   : > { %v821_v53 = vadd.f32 %v820_v45, %v819_v39  ;;  %v833_v54 = vadd.f32 %v832_v46, %v831_v40  ;;  %v826_v57 = vrot.slane %v825_v49, 1  ;;  %v838_v60 = vrot.slane %v837_v51, 1  ;;  %v1438_v7 = vpop.eup %1437 }
 0x18c   : > { %v864_v22 = vmul.f32 %v1438_v7, %v2046_v55  ;;  %v933_v55 = vrot.slane %v2088_v21, %v2020_v9  ;;  %v949_v45 = vrot.slane %v2088_v21, %v2036_v42  ;;  %v2130_v42 = vld [vmem:[%s1919_s9 + $0x10] sm:$0xff] }
 0x18d   : > { %v844_v58 = vmul.f32 0.125, %v821_v53  ;;  %v846_v59 = vmul.f32 0.125, %v833_v54  ;;  %v827_v6 = vadd.f32 %v826_v57, %v825_v49  ;;  %v839_v12 = vadd.f32 %v838_v60, %v837_v51  ;;  %v1440_v19 = vpop.eup %1439  ;;  %v2127_v54 = vld [vmem:[%s1919_s9] sm:$0xff] }
 0x18e   : > { %v866_v26 = vmul.f32 %v1440_v19, %v2048_v56  ;;  %v913_v28 = vmul.f32 %v876_v25, %v864_v22  ;;  %v892_v56 = vrot.slane %v2084_v0, %v2034_v41  ;;  %v929_v51 = vrot.slane %v2088_v21, %v2022_v10 }
 0x18f   : > { %v852_v63 = vadd.f32 1e-05, %v844_v58  ;;  %v854_v1 = vadd.f32 1e-05, %v846_v59  ;;  %v845_v20 = vmul.f32 0.125, %v827_v6  ;;  %v847_v4 = vmul.f32 0.125, %v839_v12  ;;  %v1442_v31 = vpop.eup %1441 }
 0x190   : > { %v915_v32 = vmul.f32 %v884_v5, %v866_v26  ;;  %v2100_v34 = vadd.f32 %v925_v29, %v913_v28  ;;  %v865_v18 = vmul.f32 %v1442_v31, %v2058_v2  ;;  %v941_v2 = vrot.slane %v2088_v21, %v2034_v41  ;;  %v2145_v26 = vld [vmem:[%s1919_s9 + $0x8] sm:$0xff] }
 0x191   : > { %1445 = vrsqrt.f32 %v852_v63  ;;  %v853_v27 = vadd.f32 1e-05, %v845_v20  ;;  %v855_v30 = vadd.f32 1e-05, %v847_v4  ;;  %v1444_v33 = vpop.eup %1443  ;;  %v937_v53 = vrot.slane %v2088_v21, %v2024_v11 }
 0x192   : > { %1447 = vrsqrt.f32 %v854_v1  ;;  %v2111_v39 = vadd.f32 %v933_v55, %v915_v32  ;;  %v867_v40 = vmul.f32 %v1444_v33, %v2060_v3  ;;  %v1353_v46 = vmul.f32 -1.442695, %v2100_v34 }
 0x193   : > { %1449 = vrsqrt.f32 %v853_v27  ;;  %v914_v50 = vmul.f32 %v880_v35, %v865_v18  ;;  %v896_v63 = vrot.slane %v2084_v0, %v2038_v47  ;;  %v904_v6 = vrot.slane %v2084_v0, %v2040_v48  ;;  %v2148_v27 = vld [vmem:[%s1919_s9 + $0x18] sm:$0xff] }
 0x194   : > { %1451 = vrsqrt.f32 %v855_v30  ;;  %v1355_v3 = vmul.f32 -1.442695, %v2111_v39  ;;  %v953_v22 = vrot.slane %v2088_v21, %v2040_v48  ;;  %v970_v33 = vadd.f32 %v2100_v34, %v2127_v54 }
 0x195   : > { %1453 = vpow2.f32 %v1353_v46  ;;  %v963_v58 = vadd.f32 %v929_v51, %v914_v50  ;;  %v972_v35 = vadd.f32 %v2111_v39, %v2130_v42 }
 0x196   : > { %1455 = vpow2.f32 %v1355_v3 }
 0x197   : > { %v1354_v7 = vmul.f32 -1.442695, %v963_v58  ;;  %v971_v34 = vadd.f32 %v963_v58, %v2145_v26 }
 0x19e   : > { %v1446_v17 = vpop.eup %1445 }
 0x19f   : > { %v1448_v38 = vpop.eup %1447  ;;  %v868_v43 = vmul.f32 %v1446_v17, %v2066_v13  ;;  %v916_v13 = vmul.f32 %v888_v36, %v867_v40 }
 0x1a0   : > { %v870_v44 = vmul.f32 %v1448_v38, %v2068_v14  ;;  %v1450_v1 = vpop.eup %1449 }
 0x1a1   : > { %v917_v49 = vmul.f32 %v892_v56, %v868_v43  ;;  %v965_v60 = vadd.f32 %v937_v53, %v916_v13  ;;  %v1452_v12 = vpop.eup %1451  ;;  %v869_v15 = vmul.f32 %v1450_v1, %v2074_v23 }
 0x1a2   : > { %v919_v52 = vmul.f32 %v900_v37, %v870_v44  ;;  %v871_v20 = vmul.f32 %v1452_v12, %v2076_v24  ;;  %v1454_v28 = vpop.eup %1453 }
 0x1a3   : > { %v966_v41 = vadd.f32 %v941_v2, %v917_v49  ;;  %v1356_v19 = vmul.f32 -1.442695, %v965_v60  ;;  %v918_v25 = vmul.f32 %v896_v63, %v869_v15  ;;  %v1456_v30 = vpop.eup %1455  ;;  %v1018_v48 = vadd.f32 1.0, %v1454_v28 }
 0x1a4   : > { %v968_v14 = vadd.f32 %v949_v45, %v919_v52  ;;  %v920_v4 = vmul.f32 %v904_v6, %v871_v20  ;;  %v1020_v31 = vadd.f32 1.0, %v1456_v30  ;;  %v973_v44 = vadd.f32 %v965_v60, %v2148_v27 }
 0x1a5   : > { %v978_v57 = vadd.f32 %v966_v41, %v2127_v54  ;;  %v967_v0 = vadd.f32 %v945_v16, %v918_v25 }
 0x1a6   : > { %v980_v59 = vadd.f32 %v968_v14, %v2130_v42  ;;  %v969_v5 = vadd.f32 %v953_v22, %v920_v4 }
 0x1a7   : > { %v1349_v61 = vmul.f32 -1.442695, %v978_v57  ;;  %v979_v23 = vadd.f32 %v967_v0, %v2145_v26 }
 0x1a8   : > { %v1351_v62 = vmul.f32 -1.442695, %v980_v59  ;;  %v981_v47 = vadd.f32 %v969_v5, %v2148_v27 }
 0x1a9   : > { %1457 = vpow2.f32 %v1349_v61  ;;  %v1350_v24 = vmul.f32 -1.442695, %v979_v23 }
 0x1aa   : > { %1459 = vpow2.f32 %v1351_v62  ;;  %v1352_v29 = vmul.f32 -1.442695, %v981_v47 }
 0x1ab   : > { %1461 = vpow2.f32 %v1354_v7 }
 0x1ac   : > { %1463 = vpow2.f32 %v1356_v19 }
 0x1ad   : > { %1465 = vpow2.f32 %v1350_v24 }
 0x1ae   : > { %1467 = vpow2.f32 %v1352_v29 }
 0x1af   : > { %1469 = vrcp.f32 %v1018_v48 }
 0x1b6   : > { %v1458_v21 = vpop.eup %1457 }
 0x1b7   : > { %v994_v32 = vadd.f32 1.0, %v1458_v21  ;;  %v1460_v55 = vpop.eup %1459 }
 0x1b8   : > { %v996_v56 = vadd.f32 1.0, %v1460_v55  ;;  %v1462_v17 = vpop.eup %1461 }
 0x1b9   : > { %1471 = vrcp.f32 %v994_v32  ;;  %v1464_v18 = vpop.eup %1463  ;;  %v1019_v36 = vadd.f32 1.0, %v1462_v17 }
 0x1ba   : > { %1473 = vrcp.f32 %v1020_v31  ;;  %v1021_v37 = vadd.f32 1.0, %v1464_v18  ;;  %v1466_v38 = vpop.eup %1465 }
 0x1bb   : > { %1475 = vrcp.f32 %v996_v56  ;;  %v1468_v40 = vpop.eup %1467  ;;  %v995_v43 = vadd.f32 1.0, %v1466_v38 }
 0x1bc   : > { %1477 = vtanh.f32 %v970_v33  ;;  %v997_v2 = vadd.f32 1.0, %v1468_v40  ;;  %v1470_v45 = vpop.eup %1469 }
 0x1bd   : > { %1479 = vtanh.f32 %v972_v35 }
 0x1be   : > { %1481 = vrcp.f32 %v1019_v36 }
 0x1bf   : > { %1483 = vrcp.f32 %v1021_v37 }
 0x1c0   : > { %1485 = vrcp.f32 %v995_v43 }
 0x1c1   : > { %1487 = vrcp.f32 %v997_v2 }
 0x1c2   : > { %1489 = vtanh.f32 %v971_v34 }
 0x1c3   : > { %1491 = vtanh.f32 %v973_v44 }
 0x1c6   : > { %v1472_v46 = vpop.eup %1471 }
 0x1c7   : > { %v1474_v39 = vpop.eup %1473  ;;  %v1030_v49 = vmul.f32 %v1472_v46, %v1470_v45 }
 0x1c8   : > { %v1476_v50 = vpop.eup %1475 }
 0x1c9   : > { %v1034_v51 = vsub.f32 1.0, %v1030_v49  ;;  %v1032_v52 = vmul.f32 %v1476_v50, %v1474_v39  ;;  %v1478_v3 = vpop.eup %1477 }
 0x1ca   : > { %v1042_v41 = vmul.f32 %v1478_v3, %v1030_v49  ;;  %v1480_v14 = vpop.eup %1479 }
 0x1cb   : > { %v1036_v13 = vsub.f32 1.0, %v1032_v52  ;;  %v1038_v53 = vmul.f32 %v1034_v51, %v2127_v54  ;;  %v1044_v58 = vmul.f32 %v1480_v14, %v1032_v52  ;;  %v1482_v60 = vpop.eup %1481 }
 0x1cc   : > { %v1484_v61 = vpop.eup %1483 }
 0x1cd   : > { %v1040_v57 = vmul.f32 %v1036_v13, %v2130_v42  ;;  %v1046_v59 = vadd.f32 %v1042_v41, %v1038_v53  ;;  %v1486_v1 = vpop.eup %1485 }
 0x1ce   : > { %v1488_v6 = vpop.eup %1487  ;;  %v1031_v12 = vmul.f32 %v1486_v1, %v1482_v60 }
 0x1cf   : > { %v1048_v62 = vadd.f32 %v1044_v58, %v1040_v57  ;;  %v1050_v63 = vrot.slane %v1046_v59, 4  ;;  %v1033_v16 = vmul.f32 %v1488_v6, %v1484_v61  ;;  %v1490_v54 = vpop.eup %1489 }
 0x1d0   : > { %v1035_v19 = vsub.f32 1.0, %v1031_v12  ;;  %v1492_v4 = vpop.eup %1491  ;;  %v1043_v0 = vmul.f32 %v1490_v54, %v1031_v12 }
 0x1d1   : > { %v1051_v7 = vadd.f32 %v1050_v63, %v1046_v59  ;;  %v1062_v15 = vrot.slane %v1048_v62, 4  ;;  %v1037_v25 = vsub.f32 1.0, %v1033_v16  ;;  %v1045_v28 = vmul.f32 %v1492_v4, %v1033_v16 }
 0x1d2   : > { %v1039_v42 = vmul.f32 %v1035_v19, %v2145_v26 }
 0x1d3   : > { %v1052_v20 = vrot.slane %v1051_v7, 2  ;;  %v1063_v22 = vadd.f32 %v1062_v15, %v1048_v62  ;;  %v1041_v47 = vmul.f32 %v1037_v25, %v2148_v27 }
 0x1d4   : > { %v1047_v24 = vadd.f32 %v1043_v0, %v1039_v42 }
 0x1d5   : > { %v1053_v5 = vadd.f32 %v1052_v20, %v1051_v7  ;;  %v1064_v23 = vrot.slane %v1063_v22, 2  ;;  %v1049_v48 = vadd.f32 %v1045_v28, %v1041_v47 }
 0x1d6   : > { %v1056_v31 = vrot.slane %v1047_v24, 4 }
 0x1d7   : > { %v1054_v29 = vrot.slane %v1053_v5, 1  ;;  %v1065_v30 = vadd.f32 %v1064_v23, %v1063_v22  ;;  %v1068_v55 = vrot.slane %v1049_v48, 4 }
 0x1d8   : > { %v1057_v33 = vadd.f32 %v1056_v31, %v1047_v24 }
 0x1d9   : > { %v1055_v21 = vadd.f32 %v1054_v29, %v1053_v5  ;;  %v1066_v32 = vrot.slane %v1065_v30, 1  ;;  %v1069_v18 = vadd.f32 %v1068_v55, %v1049_v48 }
 0x1da   : > { %v1058_v35 = vrot.slane %v1057_v33, 2 }
 0x1db   : > { %v1067_v56 = vadd.f32 %v1066_v32, %v1065_v30  ;;  %v1074_v17 = vmul.f32 0.125, %v1055_v21  ;;  %v1070_v37 = vrot.slane %v1069_v18, 2  ;;  %v1343_v30 = vld [vmem:[%s1930_s14 + $0x3] ss:$8 sm:$0xf] }
 0x1dc   : > { %v1059_v38 = vadd.f32 %v1058_v35, %v1057_v33  ;;  %v1344_v21 = vld [vmem:[%s1930_s14 + $0x4] ss:$8 sm:$0xf]  ;;  %v1130_v31 = vrot.slane %v1343_v30, %v2018_v8  ;;  %v1138_v33 = vrot.slane %v1343_v30, %v2020_v9 }
 0x1dd   : > { %v1076_v26 = vmul.f32 0.125, %v1067_v56  ;;  %v1078_v36 = vsub.f32 %v1046_v59, %v1074_v17  ;;  %v1071_v43 = vadd.f32 %v1070_v37, %v1069_v18  ;;  %v1155_v56 = vrot.slane %v1344_v21, %v2018_v8 }
 0x1de   : > { %v1060_v2 = vrot.slane %v1059_v38, 1 }
 0x1df   : > { %v1080_v40 = vsub.f32 %v1048_v62, %v1076_v26  ;;  %v1082_v27 = vmul.f32 %v1078_v36, %v1078_v36  ;;  %v1072_v45 = vrot.slane %v1071_v43, 1  ;;  %v1163_v26 = vrot.slane %v1344_v21, %v2020_v9 }
 0x1e0   : > { %v1061_v46 = vadd.f32 %v1060_v2, %v1059_v38  ;;  %v1142_v2 = vrot.slane %v1343_v30, %v2024_v11 }
 0x1e1   : > { %v1084_v34 = vmul.f32 %v1080_v40, %v1080_v40  ;;  %v1086_v44 = vrot.slane %v1082_v27, 4  ;;  %v1073_v50 = vadd.f32 %v1072_v45, %v1071_v43  ;;  %v1134_v43 = vrot.slane %v1343_v30, %v2022_v10 }
 0x1e2   : > { %v1075_v51 = vmul.f32 0.125, %v1061_v46 }
 0x1e3   : > { %v1087_v39 = vadd.f32 %v1086_v44, %v1082_v27  ;;  %v1098_v49 = vrot.slane %v1084_v34, 4  ;;  %v1077_v13 = vmul.f32 0.125, %v1073_v50  ;;  %v1167_v44 = vrot.slane %v1344_v21, %v2024_v11 }
 0x1e4   : > { %v1079_v53 = vsub.f32 %v1047_v24, %v1075_v51 }
 0x1e5   : > { %v1088_v52 = vrot.slane %v1087_v39, 2  ;;  %v1099_v3 = vadd.f32 %v1098_v49, %v1084_v34  ;;  %v1081_v57 = vsub.f32 %v1049_v48, %v1077_v13 }
 0x1e6   : > { %v1083_v58 = vmul.f32 %v1079_v53, %v1079_v53 }
 0x1e7   : > { %v1089_v41 = vadd.f32 %v1088_v52, %v1087_v39  ;;  %v1100_v14 = vrot.slane %v1099_v3, 2  ;;  %v1085_v61 = vmul.f32 %v1081_v57, %v1081_v57 }
 0x1e8   : > { %v1092_v63 = vrot.slane %v1083_v58, 4 }
 0x1e9   : > { %v1090_v59 = vrot.slane %v1089_v41, 1  ;;  %v1101_v60 = vadd.f32 %v1100_v14, %v1099_v3  ;;  %v1104_v6 = vrot.slane %v1085_v61, 4 }
 0x1ea   : > { %v1093_v12 = vadd.f32 %v1092_v63, %v1083_v58 }
 0x1eb   : > { %v1091_v62 = vadd.f32 %v1090_v59, %v1089_v41  ;;  %v1102_v1 = vrot.slane %v1101_v60, 1  ;;  %v1105_v16 = vadd.f32 %v1104_v6, %v1085_v61 }
 0x1ec   : > { %v1094_v19 = vrot.slane %v1093_v12, 2 }
 0x1ed   : > { %v1103_v7 = vadd.f32 %v1102_v1, %v1101_v60  ;;  %v1110_v15 = vmul.f32 0.125, %v1091_v62  ;;  %v1106_v54 = vrot.slane %v1105_v16, 2 }
 0x1ee   : > { %v1095_v25 = vadd.f32 %v1094_v19, %v1093_v12 }
 0x1ef   : > { %v1112_v20 = vmul.f32 0.125, %v1103_v7  ;;  %v1114_v22 = vadd.f32 1e-05, %v1110_v15  ;;  %v1107_v42 = vadd.f32 %v1106_v54, %v1105_v16 }
 0x1f0   : > { %v1096_v0 = vrot.slane %v1095_v25, 1 }
 0x1f1   : > { %v1116_v4 = vadd.f32 1e-05, %v1112_v20  ;;  %1493 = vrsqrt.f32 %v1114_v22  ;;  %v1108_v5 = vrot.slane %v1107_v42, 1 }
 0x1f2   : > { %v1097_v23 = vadd.f32 %v1096_v0, %v1095_v25 }
 0x1f3   : > { %1495 = vrsqrt.f32 %v1116_v4  ;;  %v1109_v47 = vadd.f32 %v1108_v5, %v1107_v42 }
 0x1f4   : > { %v1111_v28 = vmul.f32 0.125, %v1097_v23 }
 0x1f5   : > { %v1113_v24 = vmul.f32 0.125, %v1109_v47 }
 0x1f6   : > { %v1115_v29 = vadd.f32 1e-05, %v1111_v28 }
 0x1f7   : > { %v1117_v48 = vadd.f32 1e-05, %v1113_v24 }
 0x1f8   : > { %1497 = vrsqrt.f32 %v1115_v29 }
 0x1f9   : > { %1499 = vrsqrt.f32 %v1117_v48 }
 0x1fe   : > { %v1494_v32 = vpop.eup %1493 }
 0x1ff   : > { %v1122_v55 = vmul.f32 %v1494_v32, %v1078_v36 }
 0x200   : > { %v1496_v17 = vpop.eup %1495 }
 0x201   : > { %v1124_v18 = vmul.f32 %v1496_v17, %v1080_v40  ;;  %v1147_v35 = vmul.f32 %v1130_v31, %v1122_v55  ;;  %v1159_v40 = vrot.slane %v1344_v21, %v2022_v10 }
 0x203   : > { %v1149_v37 = vmul.f32 %v1138_v33, %v1124_v18  ;;  %v1172_v38 = vadd.f32 %v1155_v56, %v1147_v35 }
 0x205   : > { %v1174_v27 = vadd.f32 %v1163_v26, %v1149_v37  ;;  %1176 = vst [vmem:[%s301_s29] sm:$0xff] %v1172_v38  ;;  %v1498_v36 = vpop.eup %1497 }
 0x206   : > { %v1500_v8 = vpop.eup %1499  ;;  %v1123_v34 = vmul.f32 %v1498_v36, %v1079_v53 }
 0x207   : > { %1178 = vst [vmem:[%s301_s29 + $0x10] sm:$0xff] %v1174_v27  ;;  %v1125_v9 = vmul.f32 %v1500_v8, %v1081_v57 }
 0x208   : > { %v1148_v45 = vmul.f32 %v1134_v43, %v1123_v34 }
 0x209   : > { %v1150_v46 = vmul.f32 %v1142_v2, %v1125_v9 }
 0x20a   : > { %v1173_v39 = vadd.f32 %v1159_v40, %v1148_v45 }
 0x20b   : > { %v1175_v49 = vadd.f32 %v1167_v44, %v1150_v46 }
 0x20c   : > { %1177 = vst [vmem:[%s301_s29 + $0x8] sm:$0xff] %v1173_v39 }
 0x20d   : > { %1179 = vst [vmem:[%s301_s29 + $0x18] sm:$0xff] %v1175_v49 }
 0x20e   : > { %1624 = shalt.err (!%p1621_p5)
}
 0x20f   : > { %s1625_s20 = scalar_lea.hbm %s2178_s24, 512  ;;  %s1629_s12 = scalar_lea.hbm %s2219_s4, 1024 }
 0x210   : > { %p1626_p9 = scmp.ne.s32.totalorder %s2178_s24, %s1625_s20  ;;  %p1630_p2 = scmp.lt.s32.totalorder %s2178_s24, %s2219_s4 }
 0x211   : > { %p1631_p8 = scmp.lt.s32.totalorder %s1629_s12, %s1625_s20 }
 0x212   : > { %p1627_p10 = pnand %p1626_p9, %p2243_p3 }
 0x213   : > { %p1632_p6 = por %p1631_p8, %p1630_p2 }
 0x214   : > { %p1628_p11 = pneg %p1627_p10 }
 0x216   : > { %p1633_p4 = pnand %p1632_p6, %p1628_p11 }
 0x218   : > { %1636 = shalt.err (!%p1633_p4)
}
 0x219   : > { %1376 = dma.vmem_to_hbm [thread:$0]  (%p2243_p3), %s1196_s27, 512, %s2178_s24, %s1181_s8  }
 0x21a PF: > { %s1207_s11 = sand.u32 1, %s1671_s15   ;;  %p2244_p12 = scmp.ne.s32.totalorder %s2234_s7, 0 }
 0x21b   : > { %p2245_p7 = scmp.ge.s32.totalorder %s1683_s18, 2  ;;  %s1208_s14 = scalar_lea.sflag [#allocation4], %s1207_s11 }
 0x21d   : > { %p1393_p0 = pnand %p2245_p7, %p2244_p12 }
 0x21f   : > { %p1394_p13 = pneg %p1393_p0 }
 0x221   : > { %1666 = dma.done.wait (%p1394_p13), %s1208_s14, 512  }
 0x222   : > { %1668 = vsyncadd (%p1394_p13), %s1208_s14, 4294966784  ;;  %p21_p1 = scmp.ge.s32.totalorder %s1740_s19, 4   ;;  %s2246_s15 = smov %s1675_s16 }
 0x223   : > { %s2247_s16 = smov %s1679_s17  ;;  %s2248_s17 = smov %s1751_s22 }
 0x224   : > { %s2249_s18 = smov %s1740_s19  ;;  %23 = sbr.rel (!%p21_p1) target bundleno = 10 (0xa), region = 114 }
 0x229   :  { %1213 = vsyncpa [#allocation3], 1 }
 0x22a   :  { %1215 = vsyncpa [#allocation3 + $0x1], 1 }
 0x22b   :  { %1216 = vsyncpa [#allocation6], 1 }
 0x22c   :  { %1218 = vsyncpa [#allocation6 + $0x1], 1 }
 0x22d   :  { %1219 = vsyncpa [#allocation9], 1 }
 0x22e   :  { %1221 = vsyncpa [#allocation9 + $0x1], 1 }
 0x22f   :  { %1222 = vsyncpa [#allocation4], 1 }
 0x230   :  { %1224 = vsyncpa [#allocation4 + $0x1], 1 }

</bundles_post_ra>
